<compile_context>
chip_gen: v5e
topology: v5e:2x2
jax: 0.10.0
libtpu: 0.0.40
codegen_flags: <defaults>
</compile_context>

<pallas_src>
import functools

import numpy as np
import jax
import jax.numpy as jnp
from jax.experimental import pallas as pl
from jax.experimental.pallas import tpu as pltpu

_MIB = 1 << 20
_VMEM_BUDGET = 40 * _MIB      # per-step working-set target (fits v7x 64 MiB physical)
_VMEM_LIMIT_CAP = 56 * _MIB   # never request more scoped VMEM than this


# ----------------------------------------------------------------------------
# Bilinear interpolation weights (align_corners=False, no antialias).
# ----------------------------------------------------------------------------
def _bilinear_taps(d, i, in_size, scale):
    """Weight of input index `i` for output index `d`; border taps collapse onto the
    edge pixel so every row still sums to 1 (matches torch bilinear, antialias=False)."""
    src = (d + 0.5) * scale - 0.5
    i0 = jnp.floor(src)
    frac = src - i0
    i0c = jnp.clip(i0, 0.0, in_size - 1.0)
    i1c = jnp.clip(i0 + 1.0, 0.0, in_size - 1.0)
    return jnp.where(i == i0c, 1.0 - frac, 0.0) + jnp.where(i == i1c, frac, 0.0)


def _interp_rows(out_start, out_len, in_size, scale, dtype):
    """(out_len, in_size) weight tile; rows are output indices out_start + [0, out_len)."""
    d = (jax.lax.broadcasted_iota(jnp.int32, (out_len, in_size), 0)
         + out_start).astype(jnp.float32)
    i = jax.lax.broadcasted_iota(jnp.int32, (out_len, in_size), 1).astype(jnp.float32)
    return _bilinear_taps(d, i, in_size, scale).astype(dtype)


def _interp_cols(out_start, out_len, in_size, scale, dtype):
    """(in_size, out_len) weight tile (transposed orientation); columns are output
    indices out_start + [0, out_len)."""
    d = (jax.lax.broadcasted_iota(jnp.int32, (in_size, out_len), 1)
         + out_start).astype(jnp.float32)
    i = jax.lax.broadcasted_iota(jnp.int32, (in_size, out_len), 0).astype(jnp.float32)
    return _bilinear_taps(d, i, in_size, scale).astype(dtype)


def _to_out_dtype(x, dtype):
    if jnp.issubdtype(dtype, jnp.integer):
        info = jnp.iinfo(dtype)
        x = jnp.clip(jnp.round(x), info.min, info.max)
    return x.astype(dtype)


# ----------------------------------------------------------------------------
# Kernels.
# ----------------------------------------------------------------------------
def _resize_wfirst_kernel(img_ref, out_ref, *, cb, h, w, new_h, tn,
                          scale_h, scale_w, cdt):
    # img_ref: (cb, h, w) channel batch of the input (native dtype, resident per channel)
    # out_ref: (cb, new_h, tn) one output-width tile of the resized channels
    j = pl.program_id(1)
    # Weights generated on the VPU every step — no dense weight DMA from HBM.
    wwt = _interp_cols(j * tn, tn, w, scale_w, cdt)        # (w, tn)
    wh = _interp_rows(0, new_h, h, scale_h, cdt)           # (new_h, h)
    img = img_ref[...].astype(cdt).reshape(cb * h, w)
    # Width resize: one channel-batched MXU matmul (M = cb*h), f32 accumulation.
    tmp = jnp.dot(img, wwt, preferred_element_type=jnp.float32).astype(cdt)  # (cb*h, tn)
    for ch in range(cb):                                    # static unroll over channels
        res = jnp.dot(wh, tmp[ch * h:(ch + 1) * h, :],
                      preferred_element_type=jnp.float32)   # (new_h, tn)
        out_ref[ch] = _to_out_dtype(res, out_ref.dtype)


def _resize_hfirst_kernel(img_ref, out_ref, *, cb, h, w, new_w, tm,
                          scale_h, scale_w, cdt):
    # img_ref: (cb, h, w); out_ref: (cb, tm, new_w) one output-height tile.
    i = pl.program_id(1)
    wh = _interp_rows(i * tm, tm, h, scale_h, cdt)          # (tm, h)
    wwt = _interp_cols(0, new_w, w, scale_w, cdt)           # (w, new_w)
    img = img_ref[...].astype(cdt)                          # (cb, h, w)
    for ch in range(cb):
        tmp = jnp.dot(wh, img[ch],
                      preferred_element_type=jnp.float32).astype(cdt)   # (tm, w)
        res = jnp.dot(tmp, wwt, preferred_element_type=jnp.float32)     # (tm, new_w)
        out_ref[ch] = _to_out_dtype(res, out_ref.dtype)


# ----------------------------------------------------------------------------
# Wrapper / planning.
# ----------------------------------------------------------------------------
def _compute_dtype(image_dtype, mxu_dtype):
    if mxu_dtype is not None:
        return np.dtype(mxu_dtype)
    d = np.dtype(image_dtype)
    if jnp.issubdtype(d, jnp.integer) or d in (np.dtype(jnp.bfloat16),
                                               np.dtype(jnp.float16)):
        return np.dtype(jnp.bfloat16)   # bf16 MXU path; error < 8-bit pixel quantization
    return np.dtype(jnp.float32)


def _channel_batch(c, h):
    """Batch channels so the first matmul's M dim is >=~256 for small images."""
    if h >= 128:
        return 1
    target = max(1, 256 // h)
    cb = 1
    for d in range(1, c + 1):
        if c % d == 0 and d <= target:
            cb = d
    return cb


def _tile_candidates(dim):
    if dim <= 512:
        return (dim,)                   # single full-extent tile
    return (512, 256, 128)              # 128-aligned (256-aligned preferred for MXU)


def resize(image, bboxes=None, *, size=None, scale_range=None, key=None,
           mxu_dtype=None):
    """Functional equivalent of Resize.forward for {'image', 'bboxes'}."""
    assert size is not None or scale_range is not None
    c, h, w = image.shape

    if scale_range is not None:
        smin, smax = scale_range
        if key is None:
            key = jax.random.PRNGKey(0)
        # Host-side RNG, like random.random() in the PyTorch transform.  Output
        # shapes must be static on TPU, so the scale is materialized eagerly.
        scale = (smax - smin) * float(jax.random.uniform(key)) + smin
        size = [int(h * scale), int(w * scale)]
    new_h, new_w = int(size[0]), int(size[1])

    cdt = _compute_dtype(image.dtype, mxu_dtype)
    in_b = np.dtype(image.dtype).itemsize
    out_b = in_b
    c_b = cdt.itemsize
    scale_h = h / new_h
    scale_w = w / new_w
    cb = _channel_batch(c, h)

    # Static matmul-order choice: free FLOP cut for asymmetric resizes.
    cost_wfirst = h * new_w * (w + new_h)
    cost_hfirst = new_h * w * (h + new_w)
    width_first = cost_wfirst <= cost_hfirst

    if width_first:
        def est(tn):
            blk = 2 * cb * h * w * in_b + 2 * cb * new_h * tn * out_b  # pipelined blocks
            tmp = (new_h * h + w * tn) * c_b                           # generated weights
            tmp += cb * h * w * c_b                                    # cast image copy
            tmp += cb * h * tn * (4 + c_b)                             # width-matmul acc
            tmp += new_h * tn * 4                                      # height-matmul acc
            return blk + tmp
        cands = _tile_candidates(new_w)
        tn = next((t for t in cands if est(t) <= _VMEM_BUDGET), cands[-1])
        grid = (c // cb, pl.cdiv(new_w, tn))
        kern = functools.partial(_resize_wfirst_kernel, cb=cb, h=h, w=w,
                                 new_h=new_h, tn=tn,
                                 scale_h=scale_h, scale_w=scale_w, cdt=cdt)
        in_specs = [pl.BlockSpec((cb, h, w), lambda ci, j: (ci, 0, 0))]
        out_specs = pl.BlockSpec((cb, new_h, tn), lambda ci, j: (ci, 0, j))
        vmem_est = est(tn)
    else:
        def est(tm):
            blk = 2 * cb * h * w * in_b + 2 * cb * tm * new_w * out_b
            tmp = (tm * h + w * new_w) * c_b
            tmp += cb * h * w * c_b
            tmp += tm * w * (4 + c_b)
            tmp += tm * new_w * 4
            return blk + tmp
        cands = _tile_candidates(new_h)
        tm = next((t for t in cands if est(t) <= _VMEM_BUDGET), cands[-1])
        grid = (c // cb, pl.cdiv(new_h, tm))
        kern = functools.partial(_resize_hfirst_kernel, cb=cb, h=h, w=w,
                                 new_w=new_w, tm=tm,
                                 scale_h=scale_h, scale_w=scale_w, cdt=cdt)
        in_specs = [pl.BlockSpec((cb, h, w), lambda ci, i: (ci, 0, 0))]
        out_specs = pl.BlockSpec((cb, tm, new_w), lambda ci, i: (ci, i, 0))
        vmem_est = est(tm)

    vmem_limit = int(min(_VMEM_LIMIT_CAP, max(32 * _MIB, int(vmem_est * 1.25))))

    out_img = pl.pallas_call(
        kern,
        out_shape=jax.ShapeDtypeStruct((c, new_h, new_w), image.dtype),
        grid_spec=pltpu.PrefetchScalarGridSpec(
            num_scalar_prefetch=0,
            grid=grid,
            in_specs=in_specs,
            out_specs=out_specs,
        ),
        compiler_params=pltpu.CompilerParams(
            dimension_semantics=("parallel", "parallel"),
            vmem_limit_bytes=vmem_limit),
    )(image)

    out_bb = None
    if bboxes is not None:
        # Per the perf review: two multiplies on an (M, 4) array are not worth a
        # pallas_call launch; XLA fuses this for free.
        sx, sy = new_w / w, new_h / h
        out_bb = bboxes.astype(jnp.float32) * jnp.array([sx, sy, sx, sy],
                                                        dtype=jnp.float32)
    return out_img, out_bb


if __name__ == "__main__":
    root = jax.random.PRNGKey(0)
    kimg, kbox, kscale = jax.random.split(root, 3)

    C, H, W = 4, 16, 16
    image = jax.random.uniform(kimg, (C, H, W), dtype=jnp.float32)

    M = 8
    xmin = jnp.linspace(0.0, 8.0, M).reshape(M, 1)
    ymin = jnp.linspace(1.0, 7.0, M).reshape(M, 1)
    bboxes = jnp.concatenate([xmin, ymin, xmin + 6.0, ymin + 6.0], axis=1)

    # Fixed-size mode (16x16 -> 24x32 exercises the height-first order).
    img1, bb1 = resize(image, bboxes, size=[24, 32])
    # scale_range mode (host-side scale draw; square resize -> width-first order).
    img2, bb2 = resize(image, bboxes, scale_range=[0.5, 1.5], key=kscale)
    jax.block_until_ready((img1, bb1, img2, bb2))

    # Sanity check against a dense host-side einsum built from the same tap formula.
    def _reference(imgf, nh, nw):
        _, hh, ww = imgf.shape
        wh = _bilinear_taps(jnp.arange(nh, dtype=jnp.float32)[:, None],
                            jnp.arange(hh, dtype=jnp.float32)[None, :], hh, hh / nh)
        wwm = _bilinear_taps(jnp.arange(nw, dtype=jnp.float32)[:, None],
                             jnp.arange(ww, dtype=jnp.float32)[None, :], ww, ww / nw)
        return jnp.einsum('nh,chw,mw->cnm', wh, imgf.astype(jnp.float32), wwm)

    ref1 = _reference(image, 24, 32)
    assert jnp.allclose(img1, ref1, atol=1e-4, rtol=1e-4), \
        float(jnp.max(jnp.abs(img1 - ref1)))
    ref2 = _reference(image, int(img2.shape[1]), int(img2.shape[2]))
    assert jnp.allclose(img2, ref2, atol=1e-4, rtol=1e-4), \
        float(jnp.max(jnp.abs(img2 - ref2)))
    exp_bb = bboxes * jnp.array([32 / W, 24 / H, 32 / W, 24 / H], jnp.float32)
    assert jnp.allclose(bb1, exp_bb, atol=1e-5)

    print("KERNEL_OK")
</pallas_src>

<mosaic_0001>
module attributes {stable_mosaic.version = 11 : i64} {
  func.func @_resize_hfirst_kernel(%arg0: i32, %arg1: i32, %arg2: memref<4x16x16xf32, #tpu.memory_space<vmem>>, %arg3: memref<4x24x32xf32, #tpu.memory_space<vmem>>) attributes {dimension_semantics = [#tpu.dimension_semantics<parallel>, #tpu.dimension_semantics<parallel>], iteration_bounds = array<i64: 1, 1>, scalar_prefetch = 0 : i64, scratch_operands = 0 : i64, tpu.core_type = #tpu.core_type<tc>, window_params = [{transform_indices = @transform_0, window_bounds = array<i64: 4, 16, 16>}, {transform_indices = @transform_1, window_bounds = array<i64: 4, 24, 32>}]} {
    %c24_i32 = arith.constant 24 : i32
    %0 = arith.muli %arg1, %c24_i32 : i32
    %1 = tpu.iota {dimensions = array<i32: 0>} : vector<24x16xi32>
    %2 = vector.broadcast %0 : i32 to vector<24x16xi32>
    %3 = arith.addi %1, %2 : vector<24x16xi32>
    %4 = arith.sitofp %3 : vector<24x16xi32> to vector<24x16xf32>
    %5 = tpu.iota {dimensions = array<i32: 1>} : vector<24x16xi32>
    %6 = arith.sitofp %5 : vector<24x16xi32> to vector<24x16xf32>
    %cst = arith.constant 5.000000e-01 : f32
    %7 = vector.broadcast %cst : f32 to vector<24x16xf32>
    %8 = arith.addf %4, %7 : vector<24x16xf32>
    %cst_0 = arith.constant 0.666666686 : f32
    %9 = vector.broadcast %cst_0 : f32 to vector<24x16xf32>
    %10 = arith.mulf %8, %9 : vector<24x16xf32>
    %cst_1 = arith.constant 5.000000e-01 : f32
    %11 = vector.broadcast %cst_1 : f32 to vector<24x16xf32>
    %12 = arith.subf %10, %11 : vector<24x16xf32>
    %13 = math.floor %12 : vector<24x16xf32>
    %14 = arith.subf %12, %13 : vector<24x16xf32>
    %cst_2 = arith.constant 0.000000e+00 : f32
    %cst_3 = arith.constant 1.500000e+01 : f32
    %15 = vector.broadcast %cst_2 : f32 to vector<24x16xf32>
    %16 = arith.maximumf %15, %13 : vector<24x16xf32>
    %17 = vector.broadcast %cst_3 : f32 to vector<24x16xf32>
    %18 = arith.minimumf %17, %16 : vector<24x16xf32>
    %cst_4 = arith.constant 1.000000e+00 : f32
    %19 = vector.broadcast %cst_4 : f32 to vector<24x16xf32>
    %20 = arith.addf %13, %19 : vector<24x16xf32>
    %cst_5 = arith.constant 0.000000e+00 : f32
    %cst_6 = arith.constant 1.500000e+01 : f32
    %21 = vector.broadcast %cst_5 : f32 to vector<24x16xf32>
    %22 = arith.maximumf %21, %20 : vector<24x16xf32>
    %23 = vector.broadcast %cst_6 : f32 to vector<24x16xf32>
    %24 = arith.minimumf %23, %22 : vector<24x16xf32>
    %25 = arith.cmpf oeq, %6, %18 : vector<24x16xf32>
    %cst_7 = arith.constant 1.000000e+00 : f32
    %26 = vector.broadcast %cst_7 : f32 to vector<24x16xf32>
    %27 = arith.subf %26, %14 : vector<24x16xf32>
    %cst_8 = arith.constant 0.000000e+00 : f32
    %28 = vector.broadcast %cst_8 : f32 to vector<24x16xf32>
    %29 = arith.select %25, %27, %28 : vector<24x16xi1>, vector<24x16xf32>
    %30 = arith.cmpf oeq, %6, %24 : vector<24x16xf32>
    %cst_9 = arith.constant 0.000000e+00 : f32
    %31 = vector.broadcast %cst_9 : f32 to vector<24x16xf32>
    %32 = arith.select %30, %14, %31 : vector<24x16xi1>, vector<24x16xf32>
    %33 = arith.addf %29, %32 : vector<24x16xf32>
    %34 = tpu.iota {dimensions = array<i32: 1>} : vector<16x32xi32>
    %c0_i32 = arith.constant 0 : i32
    %35 = vector.broadcast %c0_i32 : i32 to vector<16x32xi32>
    %36 = arith.addi %34, %35 : vector<16x32xi32>
    %37 = arith.sitofp %36 : vector<16x32xi32> to vector<16x32xf32>
    %38 = tpu.iota {dimensions = array<i32: 0>} : vector<16x32xi32>
    %39 = arith.sitofp %38 : vector<16x32xi32> to vector<16x32xf32>
    %cst_10 = arith.constant 5.000000e-01 : f32
    %40 = vector.broadcast %cst_10 : f32 to vector<16x32xf32>
    %41 = arith.addf %37, %40 : vector<16x32xf32>
    %cst_11 = arith.constant 5.000000e-01 : f32
    %42 = vector.broadcast %cst_11 : f32 to vector<16x32xf32>
    %43 = arith.mulf %41, %42 : vector<16x32xf32>
    %cst_12 = arith.constant 5.000000e-01 : f32
    %44 = vector.broadcast %cst_12 : f32 to vector<16x32xf32>
    %45 = arith.subf %43, %44 : vector<16x32xf32>
    %46 = math.floor %45 : vector<16x32xf32>
    %47 = arith.subf %45, %46 : vector<16x32xf32>
    %cst_13 = arith.constant 0.000000e+00 : f32
    %cst_14 = arith.constant 1.500000e+01 : f32
    %48 = vector.broadcast %cst_13 : f32 to vector<16x32xf32>
    %49 = arith.maximumf %48, %46 : vector<16x32xf32>
    %50 = vector.broadcast %cst_14 : f32 to vector<16x32xf32>
    %51 = arith.minimumf %50, %49 : vector<16x32xf32>
    %cst_15 = arith.constant 1.000000e+00 : f32
    %52 = vector.broadcast %cst_15 : f32 to vector<16x32xf32>
    %53 = arith.addf %46, %52 : vector<16x32xf32>
    %cst_16 = arith.constant 0.000000e+00 : f32
    %cst_17 = arith.constant 1.500000e+01 : f32
    %54 = vector.broadcast %cst_16 : f32 to vector<16x32xf32>
    %55 = arith.maximumf %54, %53 : vector<16x32xf32>
    %56 = vector.broadcast %cst_17 : f32 to vector<16x32xf32>
    %57 = arith.minimumf %56, %55 : vector<16x32xf32>
    %58 = arith.cmpf oeq, %39, %51 : vector<16x32xf32>
    %cst_18 = arith.constant 1.000000e+00 : f32
    %59 = vector.broadcast %cst_18 : f32 to vector<16x32xf32>
    %60 = arith.subf %59, %47 : vector<16x32xf32>
    %cst_19 = arith.constant 0.000000e+00 : f32
    %61 = vector.broadcast %cst_19 : f32 to vector<16x32xf32>
    %62 = arith.select %58, %60, %61 : vector<16x32xi1>, vector<16x32xf32>
    %63 = arith.cmpf oeq, %39, %57 : vector<16x32xf32>
    %cst_20 = arith.constant 0.000000e+00 : f32
    %64 = vector.broadcast %cst_20 : f32 to vector<16x32xf32>
    %65 = arith.select %63, %47, %64 : vector<16x32xi1>, vector<16x32xf32>
    %66 = arith.addf %62, %65 : vector<16x32xf32>
    %c0 = arith.constant 0 : index
    %c0_21 = arith.constant 0 : index
    %c0_22 = arith.constant 0 : index
    %67 = vector.load %arg2[%c0, %c0_21, %c0_22] : memref<4x16x16xf32, #tpu.memory_space<vmem>>, vector<4x16x16xf32>
    %68 = vector.extract_strided_slice %67 {offsets = [0, 0, 0], sizes = [1, 16, 16], strides = [1, 1, 1]} : vector<4x16x16xf32> to vector<1x16x16xf32>
    %69 = vector.shape_cast %68 : vector<1x16x16xf32> to vector<16x16xf32>
    %cst_23 = arith.constant dense<0.000000e+00> : vector<24x16xf32>
    %70 = tpu.matmul %33, %69, %cst_23 {dimension_numbers = #tpu.dot_dimension_numbers<[1], [0], [0], [1], [0, 0, 1, 1], [], []>} : vector<24x16xf32>, vector<16x16xf32>, vector<24x16xf32> -> vector<24x16xf32>
    %cst_24 = arith.constant dense<0.000000e+00> : vector<24x32xf32>
    %71 = tpu.matmul %70, %66, %cst_24 {dimension_numbers = #tpu.dot_dimension_numbers<[1], [0], [0], [1], [0, 0, 1, 1], [], []>} : vector<24x16xf32>, vector<16x32xf32>, vector<24x32xf32> -> vector<24x32xf32>
    %c0_25 = arith.constant 0 : index
    %c0_26 = arith.constant 0 : index
    %c0_27 = arith.constant 0 : index
    %72 = vector.load %arg3[%c0_25, %c0_26, %c0_27] : memref<4x24x32xf32, #tpu.memory_space<vmem>>, vector<1x24x32xf32>
    %73 = vector.shape_cast %72 : vector<1x24x32xf32> to vector<24x32xf32>
    %74 = vector.shape_cast %71 : vector<24x32xf32> to vector<1x24x32xf32>
    tpu.vector_store %arg3[%c0_25, %c0_26, %c0_27], %74 {strides = array<i32>} : memref<4x24x32xf32, #tpu.memory_space<vmem>>, vector<1x24x32xf32>,
    %75 = vector.extract_strided_slice %67 {offsets = [1, 0, 0], sizes = [1, 16, 16], strides = [1, 1, 1]} : vector<4x16x16xf32> to vector<1x16x16xf32>
    %76 = vector.shape_cast %75 : vector<1x16x16xf32> to vector<16x16xf32>
    %cst_28 = arith.constant dense<0.000000e+00> : vector<24x16xf32>
    %77 = tpu.matmul %33, %76, %cst_28 {dimension_numbers = #tpu.dot_dimension_numbers<[1], [0], [0], [1], [0, 0, 1, 1], [], []>} : vector<24x16xf32>, vector<16x16xf32>, vector<24x16xf32> -> vector<24x16xf32>
    %cst_29 = arith.constant dense<0.000000e+00> : vector<24x32xf32>
    %78 = tpu.matmul %77, %66, %cst_29 {dimension_numbers = #tpu.dot_dimension_numbers<[1], [0], [0], [1], [0, 0, 1, 1], [], []>} : vector<24x16xf32>, vector<16x32xf32>, vector<24x32xf32> -> vector<24x32xf32>
    %c1 = arith.constant 1 : index
    %c0_30 = arith.constant 0 : index
    %c0_31 = arith.constant 0 : index
    %79 = vector.load %arg3[%c1, %c0_30, %c0_31] : memref<4x24x32xf32, #tpu.memory_space<vmem>>, vector<1x24x32xf32>
    %80 = vector.shape_cast %79 : vector<1x24x32xf32> to vector<24x32xf32>
    %81 = vector.shape_cast %78 : vector<24x32xf32> to vector<1x24x32xf32>
    tpu.vector_store %arg3[%c1, %c0_30, %c0_31], %81 {strides = array<i32>} : memref<4x24x32xf32, #tpu.memory_space<vmem>>, vector<1x24x32xf32>,
    %82 = vector.extract_strided_slice %67 {offsets = [2, 0, 0], sizes = [1, 16, 16], strides = [1, 1, 1]} : vector<4x16x16xf32> to vector<1x16x16xf32>
    %83 = vector.shape_cast %82 : vector<1x16x16xf32> to vector<16x16xf32>
    %cst_32 = arith.constant dense<0.000000e+00> : vector<24x16xf32>
    %84 = tpu.matmul %33, %83, %cst_32 {dimension_numbers = #tpu.dot_dimension_numbers<[1], [0], [0], [1], [0, 0, 1, 1], [], []>} : vector<24x16xf32>, vector<16x16xf32>, vector<24x16xf32> -> vector<24x16xf32>
    %cst_33 = arith.constant dense<0.000000e+00> : vector<24x32xf32>
    %85 = tpu.matmul %84, %66, %cst_33 {dimension_numbers = #tpu.dot_dimension_numbers<[1], [0], [0], [1], [0, 0, 1, 1], [], []>} : vector<24x16xf32>, vector<16x32xf32>, vector<24x32xf32> -> vector<24x32xf32>
    %c2 = arith.constant 2 : index
    %c0_34 = arith.constant 0 : index
    %c0_35 = arith.constant 0 : index
    %86 = vector.load %arg3[%c2, %c0_34, %c0_35] : memref<4x24x32xf32, #tpu.memory_space<vmem>>, vector<1x24x32xf32>
    %87 = vector.shape_cast %86 : vector<1x24x32xf32> to vector<24x32xf32>
    %88 = vector.shape_cast %85 : vector<24x32xf32> to vector<1x24x32xf32>
    tpu.vector_store %arg3[%c2, %c0_34, %c0_35], %88 {strides = array<i32>} : memref<4x24x32xf32, #tpu.memory_space<vmem>>, vector<1x24x32xf32>,
    %89 = vector.extract_strided_slice %67 {offsets = [3, 0, 0], sizes = [1, 16, 16], strides = [1, 1, 1]} : vector<4x16x16xf32> to vector<1x16x16xf32>
    %90 = vector.shape_cast %89 : vector<1x16x16xf32> to vector<16x16xf32>
    %cst_36 = arith.constant dense<0.000000e+00> : vector<24x16xf32>
    %91 = tpu.matmul %33, %90, %cst_36 {dimension_numbers = #tpu.dot_dimension_numbers<[1], [0], [0], [1], [0, 0, 1, 1], [], []>} : vector<24x16xf32>, vector<16x16xf32>, vector<24x16xf32> -> vector<24x16xf32>
    %cst_37 = arith.constant dense<0.000000e+00> : vector<24x32xf32>
    %92 = tpu.matmul %91, %66, %cst_37 {dimension_numbers = #tpu.dot_dimension_numbers<[1], [0], [0], [1], [0, 0, 1, 1], [], []>} : vector<24x16xf32>, vector<16x32xf32>, vector<24x32xf32> -> vector<24x32xf32>
    %c3 = arith.constant 3 : index
    %c0_38 = arith.constant 0 : index
    %c0_39 = arith.constant 0 : index
    %93 = vector.load %arg3[%c3, %c0_38, %c0_39] : memref<4x24x32xf32, #tpu.memory_space<vmem>>, vector<1x24x32xf32>
    %94 = vector.shape_cast %93 : vector<1x24x32xf32> to vector<24x32xf32>
    %95 = vector.shape_cast %92 : vector<24x32xf32> to vector<1x24x32xf32>
    tpu.vector_store %arg3[%c3, %c0_38, %c0_39], %95 {strides = array<i32>} : memref<4x24x32xf32, #tpu.memory_space<vmem>>, vector<1x24x32xf32>,
    return
  }
  func.func @transform_0(%arg0: i32, %arg1: i32) -> (i32, i32, i32) {
    %c0_i32 = arith.constant 0 : i32
    %c0_i32_0 = arith.constant 0 : i32
    %c0_i32_1 = arith.constant 0 : i32
    return %arg0, %c0_i32, %c0_i32_0 : i32, i32, i32
  }
  func.func @transform_1(%arg0: i32, %arg1: i32) -> (i32, i32, i32) {
    %c0_i32 = arith.constant 0 : i32
    %c0_i32_0 = arith.constant 0 : i32
    return %arg0, %arg1, %c0_i32 : i32, i32, i32
  }
}

</mosaic_0001>

<bundles_post_ra>
// kernel: tpu_custom_call.1
= control target key start
LH: loop header
LB: loop body
LE: loop exit
PB: predicated region body
PF: predicated region fallthrough
CT: control target
= control target key end

     0   :  { %6 = vsyncpa [#allocation3], 0  ;;  %s564_s0 = inlined_call_operand.hbm [shape: f32[4,16,16], index: 0, kind: input, shape index: {}]   ;;  %s565_s1 = inlined_call_operand.hbm [shape: f32[4,24,32], index: 1, kind: output, shape index: {}]  }
   0x1   :  { %7 = vsyncpa [#allocation4], 0  ;;  %s12_s8 = sshll.u32 %s564_s0, 4  ;;  %s492_s9 = smov [#allocation2]   ;;  %s13_s8 = int_to_ptr.hbm [resolvable:$true] %s12_s8 }
   0x2   :  { %s14_s10 = sshll.u32 %s492_s9, 4  ;;  %s493_s11 = smov 128   ;;  %s15_s10 = int_to_ptr.vmem [resolvable:$true] %s14_s10 }
   0x3   :  { %s494_s12 = smov 8  }
   0x4   :  { %20 = dma.hbm_to_vmem [thread:$0]  %s13_s8, 1024, %s15_s10, [#allocation3], %s493_s11, %s493_s11, %s494_s12  }
   0x5   :  { %488 = dma.done.wait [#allocation3], 1024  }
   0x6   :  { %489 = vsyncadd [#allocation3], 4294966272  ;;  %v26_v0 = vlaneseq  ;;  %v114_v8 = vld [vmem:[#allocation2 + $0x18] sm:$0xff]  ;;  %v113_v9 = vld [vmem:[#allocation2 + $0x10] sm:$0xff]  ;;  %vm119_vm2 = vcmask 130048   ;;  %vm190_vm11 = vcmask 261120  }
   0x7   :  { %208 = vmatpush.msra.mxu2 %v114_v8  ;;  %v118_v11 = vld [vmem:[#allocation2 + $0x38] sm:$0xff]  ;;  %v112_v13 = vld [vmem:[#allocation2 + $0x8] sm:$0xff]  ;;  %v111_v14 = vld [vmem:[#allocation2] sm:$0xff]  ;;  %s495_s0 = smov [#allocation5]   ;;  %s395_s16 = sshll.u32 %s565_s1, 4  ;;  %s396_s16 = int_to_ptr.hbm [resolvable:$true] %s395_s16 }
   0x8   :  { %v27_v1 = vshrl.u32 %v26_v0, 7  ;;  %v38_v15 = vand.u32 127, %v26_v0  ;;  %143 = vmatpush.msra.mxu0 %v112_v13  ;;  %v116_v16 = vld [vmem:[#allocation2 + $0x28] sm:$0xff]  ;;  %v117_v20 = vld [vmem:[#allocation2 + $0x30] sm:$0xff]  ;;  %v115_v22 = vld [vmem:[#allocation2 + $0x20] sm:$0xff]  ;;  %s393_s13 = sshll.u32 %s495_s0, 4  ;;  %s394_s13 = int_to_ptr.vmem [resolvable:$true] %s393_s13 }
   0x9   :  { %209 = vmatpush.msra.mxu2 %v113_v9 }
   0xa   :  { %v512_v2 = vcvt.s32.f32 %v27_v1  ;;  %v28_v3 = vadd.s32 8, %v27_v1  ;;  %v29_v4 = vadd.s32 16, %v27_v1  ;;  %144 = vmatpush.msra.mxu0 %v111_v14  ;;  %v39_v25 = vcvt.s32.f32 %v38_v15 }
   0xb   :  { %338 = vmatpush.msrb.mxu2 %v118_v11 }
   0xc   :  { %v40_v5 = vadd.f32 0.5, %v512_v2  ;;  %v515_v6 = vcvt.s32.f32 %v28_v3  ;;  %v36_v7 = vcvt.s32.f32 %v29_v4  ;;  %273 = vmatpush.msrb.mxu0 %v116_v16  ;;  %v90_v56 = vadd.f32 0.5, %v39_v25 }
   0xd   :  { %339 = vmatpush.msrb.mxu2 %v117_v20 }
   0xe   :  { %v43_v10 = vmul.f32 0.6666667, %v40_v5  ;;  %v41_v12 = vadd.f32 0.5, %v515_v6  ;;  %v42_v17 = vadd.f32 0.5, %v36_v7  ;;  %274 = vmatpush.msrb.mxu0 %v115_v22  ;;  %v91_v59 = vmul.f32 0.5, %v90_v56 }
  0x10   :  { %v408_v18 = vadd.f32 -0.5, %v43_v10  ;;  %v44_v19 = vmul.f32 0.6666667, %v41_v12  ;;  %v45_v21 = vmul.f32 0.6666667, %v42_v17  ;;  %v411_v61 = vadd.f32 -0.5, %v91_v59 }
  0x12   :  { %v49_v23 = vfloor.f32 %v408_v18  ;;  %v409_v24 = vadd.f32 -0.5, %v44_v19  ;;  %v410_v26 = vadd.f32 -0.5, %v45_v21  ;;  %v93_v62 = vfloor.f32 %v411_v61 }
  0x14   :  { %v52_v27 = vsub.f32 %v408_v18, %v49_v23  ;;  %v55_v28 = vmax.f32 %v49_v23, 0.0  ;;  %v61_v29 = vadd.f32 1.0, %v49_v23  ;;  %v50_v30 = vfloor.f32 %v409_v24 }
  0x15   :  { %v51_v31 = vfloor.f32 %v410_v26  ;;  %v94_v63 = vsub.f32 %v411_v61, %v93_v62  ;;  %v95_v0 = vmax.f32 %v93_v62, 0.0  ;;  %v97_v1 = vadd.f32 1.0, %v93_v62 }
  0x16   :  { %v58_v32 = vmin.f32 %v55_v28, 15.0  ;;  %v64_v33 = vmax.f32 %v61_v29, 0.0  ;;  %v73_v34 = vsub.f32 1.0, %v52_v27  ;;  %v53_v35 = vsub.f32 %v409_v24, %v50_v30 }
  0x17   :  { %v56_v36 = vmax.f32 %v50_v30, 0.0  ;;  %v62_v37 = vadd.f32 1.0, %v50_v30  ;;  %v63_v39 = vadd.f32 1.0, %v51_v31  ;;  %v57_v47 = vmax.f32 %v51_v31, 0.0 }
  0x18   :  { %v67_v38 = vmin.f32 %v64_v33, 15.0  ;;  %vm70_vm0 = vcmp.eq.f32.partialorder %v39_v25, %v58_v32  ;;  %v74_v45 = vsub.f32 1.0, %v53_v35  ;;  %v54_v51 = vsub.f32 %v410_v26, %v51_v31 }
  0x19   :  { %v76_v40 = vsel %vm70_vm0, %v73_v34, 0.0  ;;  %v59_v41 = vmin.f32 %v56_v36, 15.0  ;;  %v65_v42 = vmax.f32 %v62_v37, 0.0  ;;  %v66_v48 = vmax.f32 %v63_v39, 0.0 }
  0x1a   :  { %vm79_vm1 = vcmp.eq.f32.partialorder %v39_v25, %v67_v38  ;;  %v60_v52 = vmin.f32 %v57_v47, 15.0  ;;  %v75_v55 = vsub.f32 1.0, %v54_v51  ;;  %v96_v3 = vmin.f32 %v95_v0, 15.0 }
  0x1b   :  { %v82_v43 = vsel %vm79_vm1, %v52_v27, 0.0  ;;  %v68_v44 = vmin.f32 %v65_v42, 15.0  ;;  %vm71_vm3 = vcmp.eq.f32.partialorder %v39_v25, %v59_v41  ;;  %v69_v53 = vmin.f32 %v66_v48, 15.0 }
  0x1c   :  { %v85_v46 = vadd.f32 %v82_v43, %v76_v40  ;;  %v77_v49 = vsel %vm71_vm3, %v74_v45, 0.0  ;;  %vm72_vm5 = vcmp.eq.f32.partialorder %v39_v25, %v60_v52  ;;  %v98_v4 = vmax.f32 %v97_v1, 0.0 }
  0x1d   :  { %vm80_vm4 = vcmp.eq.f32.partialorder %v39_v25, %v68_v44  ;;  %vm81_vm6 = vcmp.eq.f32.partialorder %v39_v25, %v69_v53  ;;  %v78_v57 = vsel %vm72_vm5, %v75_v55, 0.0  ;;  %v102_v5 = vsub.f32 1.0, %v94_v63 }
  0x1e   :  { %418 = vmatmul.msk.f32.vlgmr.msra.gmra.mxu2 %vm119_vm2, %v85_v46  ;;  %412 = vmatmul.msk.f32.vlgmr.msra.gmra.mxu0 %vm119_vm2, %v85_v46  ;;  %v83_v50 = vsel %vm80_vm4, %v53_v35, 0.0  ;;  %v84_v58 = vsel %vm81_vm6, %v54_v51, 0.0  ;;  %v99_v7 = vmin.f32 %v98_v4, 15.0  ;;  %vm101_vm7 = vcmp.eq.f32.partialorder %v515_v6, %v96_v3 }
  0x1f   :  { %v86_v54 = vadd.f32 %v83_v50, %v77_v49  ;;  %v87_v60 = vadd.f32 %v84_v58, %v78_v57  ;;  %v104_v8 = vsel %vm101_vm7, %v102_v5, 0.0  ;;  %vm100_vm9 = vcmp.eq.f32.partialorder %v512_v2, %v96_v3 }
  0x20   :  { %vm106_vm8 = vcmp.eq.f32.partialorder %v515_v6, %v99_v7  ;;  %vm105_vm10 = vcmp.eq.f32.partialorder %v512_v2, %v99_v7  ;;  %v103_v6 = vsel %vm100_vm9, %v102_v5, 0.0 }
  0x21   :  { %v108_v9 = vsel %vm106_vm8, %v94_v63, 0.0  ;;  %v107_v11 = vsel %vm105_vm10, %v94_v63, 0.0 }
  0x22   :  { %v110_v10 = vadd.f32 %v108_v9, %v104_v8  ;;  %v109_v12 = vadd.f32 %v107_v11, %v103_v6 }
  0x24   :  { %243 = vmatpush.msra.mxu3 %v110_v10  ;;  %178 = vmatpush.msra.mxu1 %v110_v10 }
  0x26   :  { %419 = vmatmul.msk.f32.gmra.mxu2 %vm119_vm2, %v86_v54  ;;  %413 = vmatmul.msk.f32.gmra.mxu0 %vm119_vm2, %v86_v54 }
  0x27   :  { %244 = vmatpush.msra.mxu3 %v109_v12  ;;  %179 = vmatpush.msra.mxu1 %v109_v12 }
  0x29   :  { %373 = vmatpush.msrb.mxu3 %v110_v10  ;;  %308 = vmatpush.msrb.mxu1 %v110_v10 }
  0x2b   :  { %374 = vmatpush.msrb.mxu3 %v109_v12  ;;  %309 = vmatpush.msrb.mxu1 %v109_v12 }
  0x2e   :  { %420 = vmatmul.msk.f32.gmra.mxu2 %vm119_vm2, %v87_v60  ;;  %414 = vmatmul.msk.f32.gmra.mxu0 %vm119_vm2, %v87_v60 }
  0x36   :  { %430 = vmatmul.msk.f32.vlgmr.msrb.gmra.mxu2 %vm119_vm2, %v85_v46  ;;  %424 = vmatmul.msk.f32.vlgmr.msrb.gmra.mxu0 %vm119_vm2, %v85_v46 }
  0x3e   :  { %431 = vmatmul.msk.f32.gmra.mxu2 %vm119_vm2, %v86_v54  ;;  %425 = vmatmul.msk.f32.gmra.mxu0 %vm119_vm2, %v86_v54 }
  0x46   :  { %432 = vmatmul.msk.f32.gmra.mxu2 %vm119_vm2, %v87_v60  ;;  %426 = vmatmul.msk.f32.gmra.mxu0 %vm119_vm2, %v87_v60 }
  0x9b   :  { %v146_v13 = vpop.f32.mrf.mxu0 }
  0x9c   :  { %415 = vmatmul.msk.f32.vlgmr.msra.gmra.mxu1 %vm119_vm2, %v146_v13 }
  0xa1   :  { %v211_v14 = vpop.f32.mrf.mxu2 }
  0xa2   :  { %421 = vmatmul.msk.f32.vlgmr.msra.gmra.mxu3 %vm119_vm2, %v211_v14 }
  0xa3   :  { %v149_v15 = vpop.f32.mrf.mxu0 }
  0xa4   :  { %416 = vmatmul.msk.f32.gmra.mxu1 %vm119_vm2, %v149_v15 }
  0xa9   :  { %v214_v16 = vpop.f32.mrf.mxu2 }
  0xaa   :  { %422 = vmatmul.msk.f32.gmra.mxu3 %vm119_vm2, %v214_v16 }
  0xab   :  { %v152_v2 = vpop.f32.mrf.mxu0 }
  0xac   :  { %417 = vmatmul.msk.f32.gmra.mxu1 %vm119_vm2, %v152_v2 }
  0xb1   :  { %v217_v17 = vpop.f32.mrf.mxu2 }
  0xb2   :  { %423 = vmatmul.msk.f32.gmra.mxu3 %vm119_vm2, %v217_v17 }
  0xb3   :  { %v276_v18 = vpop.f32.mrf.mxu0 }
  0xb4   :  { %427 = vmatmul.msk.f32.vlgmr.msrb.gmra.mxu1 %vm119_vm2, %v276_v18 }
  0xb9   :  { %v341_v19 = vpop.f32.mrf.mxu2 }
  0xba   :  { %433 = vmatmul.msk.f32.vlgmr.msrb.gmra.mxu3 %vm119_vm2, %v341_v19 }
  0xbb   :  { %v279_v20 = vpop.f32.mrf.mxu0 }
  0xbc   :  { %428 = vmatmul.msk.f32.gmra.mxu1 %vm119_vm2, %v279_v20 }
  0xc1   :  { %v344_v21 = vpop.f32.mrf.mxu2 }
  0xc2   :  { %434 = vmatmul.msk.f32.gmra.mxu3 %vm119_vm2, %v344_v21 }
  0xc3   :  { %v282_v22 = vpop.f32.mrf.mxu0 }
  0xc4   :  { %429 = vmatmul.msk.f32.gmra.mxu1 %vm119_vm2, %v282_v22 }
  0xc9   :  { %v347_v23 = vpop.f32.mrf.mxu2 }
  0xca   :  { %435 = vmatmul.msk.f32.gmra.mxu3 %vm119_vm2, %v347_v23 }
 0x119   :  { %v181_v24 = vpop.f32.mrf.mxu1 }
 0x11a   :  { %191 = vst.msk [vmem:[#allocation5] sm:$0xff] %vm190_vm11, %v181_v24 }
 0x121   :  { %v184_v25 = vpop.f32.mrf.mxu1 }
 0x122   :  { %192 = vst.msk [vmem:[#allocation5 + $0x8] sm:$0xff] %vm190_vm11, %v184_v25 }
 0x125   :  { %v246_v26 = vpop.f32.mrf.mxu3 }
 0x126   :  { %256 = vst.msk [vmem:[#allocation5 + $0x18] sm:$0xff] %vm190_vm11, %v246_v26 }
 0x129   :  { %v187_v27 = vpop.f32.mrf.mxu1 }
 0x12a   :  { %193 = vst.msk [vmem:[#allocation5 + $0x10] sm:$0xff] %vm190_vm11, %v187_v27 }
 0x12d   :  { %v249_v28 = vpop.f32.mrf.mxu3 }
 0x12e   :  { %257 = vst.msk [vmem:[#allocation5 + $0x20] sm:$0xff] %vm190_vm11, %v249_v28 }
 0x131   :  { %v311_v29 = vpop.f32.mrf.mxu1 }
 0x132   :  { %321 = vst.msk [vmem:[#allocation5 + $0x30] sm:$0xff] %vm190_vm11, %v311_v29 }
 0x135   :  { %v252_v30 = vpop.f32.mrf.mxu3 }
 0x136   :  { %258 = vst.msk [vmem:[#allocation5 + $0x28] sm:$0xff] %vm190_vm11, %v252_v30 }
 0x139   :  { %v314_v31 = vpop.f32.mrf.mxu1 }
 0x13a   :  { %322 = vst.msk [vmem:[#allocation5 + $0x38] sm:$0xff] %vm190_vm11, %v314_v31 }
 0x13d   :  { %v376_v32 = vpop.f32.mrf.mxu3 }
 0x13e   :  { %386 = vst.msk [vmem:[#allocation5 + $0x48] sm:$0xff] %vm190_vm11, %v376_v32 }
 0x141   :  { %v317_v33 = vpop.f32.mrf.mxu1 }
 0x142   :  { %323 = vst.msk [vmem:[#allocation5 + $0x40] sm:$0xff] %vm190_vm11, %v317_v33 }
 0x145   :  { %v379_v34 = vpop.f32.mrf.mxu3 }
 0x146   :  { %387 = vst.msk [vmem:[#allocation5 + $0x50] sm:$0xff] %vm190_vm11, %v379_v34 }
 0x14d   :  { %v382_v35 = vpop.f32.mrf.mxu3 }
 0x14e   :  { %388 = vst.msk [vmem:[#allocation5 + $0x58] sm:$0xff] %vm190_vm11, %v382_v35 }
 0x14f   :  { %401 = dma.vmem_to_hbm [thread:$0]  %s394_s13, 1536, %s396_s16, [#allocation4], %s493_s11, %s493_s11, %s494_s12  }
 0x150   :  { %490 = dma.done.wait [#allocation4], 1536  }
 0x151   :  { %491 = vsyncadd [#allocation4], 4294965760 }
 0x152   :  { %406 = vsyncpa [#allocation3], 1 }
 0x153   :  { %407 = vsyncpa [#allocation4], 1 }

</bundles_post_ra>
